<compile_context>
chip_gen: v7x
topology: tpu7x:2x2x1
jax: 0.10.0
libtpu: 0.0.40
codegen_flags: <defaults>
</compile_context>

<pallas_src>
import jax
import jax.numpy as jnp
from jax.experimental import pallas as pl
from jax.experimental.pallas import tpu as pltpu


def _square_kernel(x_ref, o_ref):
    # Elementwise hot path: one VPU multiply over the whole VMEM tile.
    v = x_ref[...]
    o_ref[...] = v * v


def _square_single_block(x: jax.Array) -> jax.Array:
    # Whole-array single block (block shape == full array dims, which is
    # always legal). Used for small or ragged shapes.
    return pl.pallas_call(
        _square_kernel,
        out_shape=jax.ShapeDtypeStruct(x.shape, x.dtype),
    )(x)


def squared(x: jax.Array, *, target_block_bytes: int = 2 << 20) -> jax.Array:
    """Elementwise square, matching torch.square(x) semantics (shape & dtype)."""
    orig_shape = x.shape
    total = x.size
    if total == 0:
        return x

    # Widest lane-dense layout that tiles the flat array with NO padding.
    lanes = None
    for cand in (1024, 512, 256, 128):
        if total % cand == 0:
            lanes = cand
            break
    if lanes is None:
        # Ragged total (not a multiple of 128): one full-array block.
        # TODO(synk): add a tiled+masked path for ragged arrays too large for VMEM.
        return _square_single_block(x)

    rows = total // lanes
    x2d = x.reshape(rows, lanes)
    itemsize = x2d.dtype.itemsize

    if rows * lanes * itemsize <= target_block_bytes:
        # Small array: single block, one invocation, no tail handling.
        return _square_single_block(x2d).reshape(orig_shape)

    # Large array: ~2 MiB lane-dense blocks. Row count is a multiple of 32 so
    # the block shape is legal for any dtype packing. In this branch
    # rows > block_rows always holds (otherwise we'd have taken the
    # single-block path), so the min() below never produces a ragged block.
    block_rows = max(32, (target_block_bytes // (lanes * itemsize)) // 32 * 32)
    block_rows = min(block_rows, rows)
    grid = (pl.cdiv(rows, block_rows),)

    out2d = pl.pallas_call(
        _square_kernel,
        out_shape=jax.ShapeDtypeStruct((rows, lanes), x2d.dtype),
        grid_spec=pltpu.PrefetchScalarGridSpec(
            num_scalar_prefetch=0,
            grid=grid,
            in_specs=[pl.BlockSpec((block_rows, lanes), lambda i: (i, 0))],
            out_specs=pl.BlockSpec((block_rows, lanes), lambda i: (i, 0)),
        ),
        compiler_params=pltpu.CompilerParams(
            dimension_semantics=("parallel",),   # v7x: shard grid across 2 TCs
            vmem_limit_bytes=32 * 1024 * 1024,   # headroom; <= physical on all gens
        ),
    )(x2d)
    return out2d.reshape(orig_shape)


if __name__ == "__main__":
    key = jax.random.PRNGKey(0)

    # Small NCHW input consistent with the braindecode conv pipeline.
    x = jax.random.normal(key, (2, 4, 16, 16), dtype=jnp.float32)
    y = jax.block_until_ready(squared(x))
    ref = x * x
    assert y.shape == x.shape and y.dtype == x.dtype
    assert jnp.allclose(y, ref, atol=0.0, rtol=0.0)

    # Exercise the tiled (multi-block, grid >= 2) path once.
    x_big = jax.random.normal(key, (4, 8, 256, 256), dtype=jnp.float32)
    y_big = jax.block_until_ready(squared(x_big))
    assert jnp.allclose(y_big, x_big * x_big, atol=0.0, rtol=0.0)

    # Exercise the ragged / single-block fallback once.
    x_rag = jax.random.normal(key, (3, 5, 7), dtype=jnp.float32)
    y_rag = jax.block_until_ready(squared(x_rag))
    assert jnp.allclose(y_rag, x_rag * x_rag, atol=0.0, rtol=0.0)

    print("KERNEL_OK")
</pallas_src>

<mosaic_0001>
module attributes {stable_mosaic.version = 11 : i64} {
  func.func @_square_kernel(%arg0: memref<2x1024xf32, #tpu.memory_space<vmem>>, %arg1: memref<2x1024xf32, #tpu.memory_space<vmem>>) attributes {dimension_semantics = [], scalar_prefetch = 0 : i64, scratch_operands = 0 : i64, tpu.core_type = #tpu.core_type<tc>} {
    %c0 = arith.constant 0 : index
    %c0_0 = arith.constant 0 : index
    %0 = vector.load %arg0[%c0, %c0_0] : memref<2x1024xf32, #tpu.memory_space<vmem>>, vector<2x1024xf32>
    %1 = arith.mulf %0, %0 : vector<2x1024xf32>
    %c0_1 = arith.constant 0 : index
    %c0_2 = arith.constant 0 : index
    %2 = vector.load %arg1[%c0_1, %c0_2] : memref<2x1024xf32, #tpu.memory_space<vmem>>, vector<2x1024xf32>
    tpu.vector_store %arg1[%c0_1, %c0_2], %1 {strides = array<i32>} : memref<2x1024xf32, #tpu.memory_space<vmem>>, vector<2x1024xf32>,
    return
  }
}

</mosaic_0001>

<bundles_post_ra>
// kernel: tpu_custom_call.1
= control target key start
LH: loop header
LB: loop body
LE: loop exit
PB: predicated region body
PF: predicated region fallthrough
CT: control target
= control target key end

     0   :  { %6 = vsyncpa [#allocation3], 0  ;;  %s128_s0 = inlined_call_operand.hbm [shape: f32[2,1024], index: 0, kind: input, shape index: {}]   ;;  %s129_s1 = inlined_call_operand.hbm [shape: f32[2,1024], index: 1, kind: output, shape index: {}]  }
   0x1   :  { %7 = vsyncpa [#allocation4], 0  ;;  %s92_s6 = smov [#allocation2]   ;;  %s44_s10 = scalar_lea.hbm %s128_s0, 256 }
   0x2   :  { %s14_s7 = sshll.u32 %s92_s6, 4  ;;  %p45_p0 = scmp.ne.s32.totalorder %s128_s0, %s44_s10  ;;  %s15_s7 = int_to_ptr.vmem [resolvable:$true] %s14_s7 }
   0x3   :  { %p48_p1 = scmp.lt.u32.totalorder %s44_s10, %s128_s0 }
   0x5   :  { %p50_p2 = pnand %p48_p1, %p45_p0 }
   0x7   :  { %53 = shalt.err (!%p50_p2)
}
   0x8   :  { %s54_s15 = scalar_lea.vmem %s15_s7, 256  ;;  %p59_p4 = scmp.lt.s32.totalorder %s15_s7, %s15_s7 }
   0x9   :  { %p55_p3 = scmp.ne.s32.totalorder %s15_s7, %s54_s15  ;;  %p60_p5 = scmp.lt.s32.totalorder %s54_s15, %s54_s15 }
   0xb   :  { %p61_p6 = por %p60_p5, %p59_p4 }
   0xd   :  { %p62_p7 = pnand %p61_p6, %p55_p3 }
   0xf   :  { %65 = shalt.err (!%p62_p7)
}
  0x10   :  { %17 = dma.hbm_to_vmem [thread:$0]  %s128_s0, 256, %s15_s7, [#allocation3]  }
  0x11   :  { %88 = dma.done.wait [#allocation3], 256  }
  0x12   :  { %89 = vsyncadd [#allocation3], 4294967040  ;;  %s93_s18 = smov [#allocation5]   ;;  %v21_v0 = vld [vmem:[#allocation2] sm:$0xff]  ;;  %v22_v1 = vld [vmem:[#allocation2 + $0x8] sm:$0xff] }
  0x13   :  { %s33_s19 = sshll.u32 %s93_s18, 4  ;;  %v23_v2 = vmul.f32 %v21_v0, %v21_v0  ;;  %v24_v3 = vmul.f32 %v22_v1, %v22_v1  ;;  %s34_s19 = int_to_ptr.vmem [resolvable:$true] %s33_s19 }
  0x14   :  { %s66_s20 = scalar_lea.vmem %s34_s19, 256  ;;  %p71_p9 = scmp.lt.s32.totalorder %s34_s19, %s34_s19 }
  0x15   :  { %25 = vst [vmem:[#allocation5] sm:$0xff] %v23_v2  ;;  %26 = vst [vmem:[#allocation5 + $0x8] sm:$0xff] %v24_v3  ;;  %p67_p8 = scmp.ne.s32.totalorder %s34_s19, %s66_s20  ;;  %p72_p10 = scmp.lt.s32.totalorder %s66_s20, %s66_s20 }
  0x17   :  { %p73_p11 = por %p72_p10, %p71_p9 }
  0x19   :  { %p74_p12 = pnand %p73_p11, %p67_p8 }
  0x1b   :  { %77 = shalt.err (!%p74_p12)
}
  0x1c   :  { %s78_s22 = scalar_lea.hbm %s129_s1, 256 }
  0x1d   :  { %p79_p13 = scmp.ne.s32.totalorder %s129_s1, %s78_s22  ;;  %p82_p0 = scmp.lt.u32.totalorder %s78_s22, %s129_s1 }
  0x1f   :  { %p84_p1 = pnand %p82_p0, %p79_p13 }
  0x21   :  { %87 = shalt.err (!%p84_p1)
}
  0x22   :  { %36 = dma.vmem_to_hbm [thread:$0]  %s34_s19, 256, %s129_s1, [#allocation4]  }
  0x23   :  { %90 = dma.done.wait [#allocation4], 256  }
  0x24   :  { %91 = vsyncadd [#allocation4], 4294967040 }
  0x25   :  { %40 = vsyncpa [#allocation3], 1 }
  0x26   :  { %41 = vsyncpa [#allocation4], 1 }

</bundles_post_ra>
